<compile_context>
chip_gen: v6e
topology: v6e:2x2x1
jax: 0.10.0
libtpu: 0.0.40
codegen_flags: <defaults>
</compile_context>

<pallas_src>
import functools
import math

import jax
import jax.numpy as jnp
from jax.experimental import pallas as pl
from jax.experimental.pallas import tpu as pltpu


def _round_up(x: int, m: int) -> int:
    return (x + m - 1) // m * m


def _time_embed_mlp_kernel(t_idx_ref, table_hbm, w1_ref, b1_ref, w2_ref, b2_ref,
                           o_ref, emb_ref, row_sem):
    """Fused: HBM row gather (DMA) -> Linear(E->Hp) -> Swish -> Linear(Hp->Hp).

    t_idx_ref : (Bp,)    int32 SMEM  timestep indices (scalar-prefetched)
    table_hbm : (T, E)   f32   HBM   sinusoidal embedding table (never fully DMA'd)
    w1_ref    : (E, Hp)  f32   VMEM  first linear weight  (zero lane-padded)
    b1_ref    : (1, Hp)  f32   VMEM
    w2_ref    : (Hp, Hp) f32   VMEM  second linear weight (zero padded)
    b2_ref    : (1, Hp)  f32   VMEM
    o_ref     : (TB, Hp) f32   VMEM  output tile
    emb_ref   : (TB, E)  f32   VMEM  scratch: gathered embedding rows
    row_sem   : (TB,)    DMA semaphores, one per row copy
    """
    TB, E = emb_ref.shape
    base = pl.program_id(0) * TB

    # Gather only the TB needed rows straight from HBM.  All starts are issued
    # before any wait, so the tiny row DMAs overlap each other (and the weight
    # pipeline DMAs) instead of serializing on the load/store slots.
    for i in range(TB):
        idx = t_idx_ref[base + i]
        pltpu.make_async_copy(table_hbm.at[pl.ds(idx, 1), :],
                              emb_ref.at[pl.ds(i, 1), :],
                              row_sem.at[i]).start()
    for i in range(TB):
        # Dummy src index: only the copy shape matters for the wait.
        pltpu.make_async_copy(table_hbm.at[pl.ds(0, 1), :],
                              emb_ref.at[pl.ds(i, 1), :],
                              row_sem.at[i]).wait()

    x = emb_ref[...]                                                   # (TB, E) f32

    # f32 MXU matmuls (parity with the f32 PyTorch module), f32 VPU/EUP epilogue
    # (also lowers on v5e which has no bf16 VPU/EUP).
    h = jnp.dot(x, w1_ref[...], preferred_element_type=jnp.float32) + b1_ref[...]
    h = h * jax.nn.sigmoid(h)                                          # Swish
    o = jnp.dot(h, w2_ref[...], preferred_element_type=jnp.float32) + b2_ref[...]
    o_ref[...] = o.astype(o_ref.dtype)                                 # lane-dense store


def prepare_params(w1, b1, w2, b2):
    """One-time packing: lane-pad hidden dim to a multiple of 128 (weights f32).

    Zero padding keeps semantics exact: padded hidden columns are 0 after the
    first Linear + Swish, padded W2 rows/cols are 0, so padded outputs are 0
    and are sliced away in the wrapper.
    """
    E, H = w1.shape
    Hp = _round_up(max(H, 128), 128)
    w1p = jnp.zeros((E, Hp), jnp.float32).at[:, :H].set(w1.astype(jnp.float32))
    b1p = jnp.zeros((1, Hp), jnp.float32).at[0, :H].set(b1.astype(jnp.float32))
    w2p = jnp.zeros((Hp, Hp), jnp.float32).at[:H, :H].set(w2.astype(jnp.float32))
    b2p = jnp.zeros((1, Hp), jnp.float32).at[0, :H].set(b2.astype(jnp.float32))
    return w1p, b1p, w2p, b2p


@functools.partial(jax.jit, static_argnames=("hidden_dim",))
def time_embedding_projection(t, table, w1p, b1p, w2p, b2p, *, hidden_dim):
    """Forward pass of TimeEmbeddingProjection for a batch of timesteps."""
    B = t.shape[0]
    T, E = table.shape
    Hp = w1p.shape[1]

    # Batch tiling: up to 32 rows per grid step (one DMA semaphore per row).
    # Batching many timesteps per call amortizes weight DMA + launch overhead;
    # the parallel grid axis lets v7x's two TensorCores split the rows.
    Bp = _round_up(max(B, 8), 8)
    TB = min(Bp, 32)
    Bp = _round_up(Bp, TB)
    grid = (Bp // TB,)

    # Clamp indices for DMA memory safety (jnp.take-style; torch would raise).
    # Padded batch rows read row 0 and are sliced away below.
    tp = jnp.zeros((Bp,), jnp.int32).at[:B].set(
        jnp.clip(t.astype(jnp.int32), 0, T - 1))

    out = pl.pallas_call(
        _time_embed_mlp_kernel,
        out_shape=jax.ShapeDtypeStruct((Bp, Hp), jnp.float32),
        grid_spec=pltpu.PrefetchScalarGridSpec(
            num_scalar_prefetch=1,                               # t indices -> SMEM
            grid=grid,
            in_specs=[
                pl.BlockSpec(memory_space=pl.ANY),               # table stays in HBM
                pl.BlockSpec((E, Hp), lambda b, t: (0, 0)),      # W1 (VMEM-resident)
                pl.BlockSpec((1, Hp), lambda b, t: (0, 0)),      # b1
                pl.BlockSpec((Hp, Hp), lambda b, t: (0, 0)),     # W2
                pl.BlockSpec((1, Hp), lambda b, t: (0, 0)),      # b2
            ],
            out_specs=pl.BlockSpec((TB, Hp), lambda b, t: (b, 0)),
            scratch_shapes=[
                pltpu.VMEM((TB, E), jnp.float32),                # gathered rows
                pltpu.SemaphoreType.DMA((TB,)),                  # per-row DMA sems
            ],
        ),
        compiler_params=pltpu.CompilerParams(
            dimension_semantics=("parallel",),                   # v7x: both TCs
        ),
    )(tp, table, w1p, b1p, w2p, b2p)

    return out[:B, :hidden_dim]


def make_sinusoidal_table(T, embedding_dim):
    """Exactly mirrors the PyTorch module's table (note: exp(+...) as written)."""
    assert embedding_dim % 2 == 0
    position = jnp.arange(T, dtype=jnp.float32)                               # (T,)
    freqs = jnp.exp(
        jnp.arange(0, embedding_dim, 2, dtype=jnp.float32)
        / embedding_dim
        * math.log(10000.0)
    )                                                                          # (E/2,)
    ang = position[:, None] * freqs[None, :]                                   # (T, E/2)
    return jnp.concatenate([jnp.sin(ang), jnp.cos(ang)], axis=-1)              # (T, E)


def _xavier_uniform(key, fan_in, fan_out):
    a = math.sqrt(6.0 / (fan_in + fan_out))
    return jax.random.uniform(key, (fan_in, fan_out), jnp.float32, -a, a)


if __name__ == "__main__":
    # Small shapes consistent with the module: T diffusion steps, E embedding
    # dim, H hidden dim, B batch of timestep indices.
    T_steps, E, H, B = 1000, 32, 64, 8

    key = jax.random.PRNGKey(0)
    k_w1, k_w2, k_t = jax.random.split(key, 3)

    # Matches init_weights: xavier-uniform weights, zero biases.
    # Stored as (in_features, out_features) so the kernel computes x @ W + b.
    w1 = _xavier_uniform(k_w1, E, H)
    b1 = jnp.zeros((H,), jnp.float32)
    w2 = _xavier_uniform(k_w2, H, H)
    b2 = jnp.zeros((H,), jnp.float32)

    table = make_sinusoidal_table(T_steps, E)
    t = jax.random.randint(k_t, (B,), 0, T_steps, dtype=jnp.int32)

    params = prepare_params(w1, b1, w2, b2)
    out = time_embedding_projection(t, table, *params, hidden_dim=H)
    out = jax.block_until_ready(out)
    assert out.shape == (B, H)

    # f32 PyTorch-semantics reference (table gather -> Linear -> Swish -> Linear).
    emb = jnp.take(table, t, axis=0)
    h_f = jnp.dot(emb, w1, precision=jax.lax.Precision.HIGHEST) + b1
    h_f = h_f * jax.nn.sigmoid(h_f)
    out_f = jnp.dot(h_f, w2, precision=jax.lax.Precision.HIGHEST) + b2
    assert jnp.allclose(out, out_f, atol=2e-2, rtol=2e-2), \
        float(jnp.max(jnp.abs(out - out_f)))

    print("KERNEL_OK")
</pallas_src>

<mosaic_0001>
module attributes {stable_mosaic.version = 11 : i64} {
  func.func @_time_embed_mlp_kernel(%arg0: i32, %arg1: memref<8xi32, #tpu.memory_space<smem>>, %arg2: memref<1000x32xf32, #tpu.memory_space<any>>, %arg3: memref<32x128xf32, #tpu.memory_space<vmem>>, %arg4: memref<1x128xf32, #tpu.memory_space<vmem>>, %arg5: memref<128x128xf32, #tpu.memory_space<vmem>>, %arg6: memref<1x128xf32, #tpu.memory_space<vmem>>, %arg7: memref<8x128xf32, #tpu.memory_space<vmem>>, %arg8: memref<8x32xf32, #tpu.memory_space<vmem>>, %arg9: memref<8x!tpu.dma_semaphore, #tpu.memory_space<semaphore_mem>>) attributes {dimension_semantics = [#tpu.dimension_semantics<parallel>], iteration_bounds = array<i64: 1>, scalar_prefetch = 1 : i64, scratch_operands = 2 : i64, tpu.core_type = #tpu.core_type<tc>, window_params = [{}, {pipeline_mode = #tpu.pipeline_mode<synchronous>, transform_indices = @transform_1, window_bounds = array<i64: 32, 128>}, {pipeline_mode = #tpu.pipeline_mode<synchronous>, transform_indices = @transform_2, window_bounds = array<i64: 1, 128>}, {pipeline_mode = #tpu.pipeline_mode<synchronous>, transform_indices = @transform_3, window_bounds = array<i64: 128, 128>}, {pipeline_mode = #tpu.pipeline_mode<synchronous>, transform_indices = @transform_4, window_bounds = array<i64: 1, 128>}, {transform_indices = @transform_5, window_bounds = array<i64: 8, 128>}]} {
    %c8_i32 = arith.constant 8 : i32
    %0 = arith.muli %arg0, %c8_i32 : i32
    %c0_i32 = arith.constant 0 : i32
    %1 = arith.addi %0, %c0_i32 : i32
    %2 = arith.index_cast %1 : i32 to index
    %3 = memref.load %arg1[%2] : memref<8xi32, #tpu.memory_space<smem>>
    %c0_i32_0 = arith.constant 0 : i32
    %c0_i32_1 = arith.constant 0 : i32
    %4 = tpu.memref_slice %arg2[%3, %c0_i32_1] : memref<1000x32xf32, #tpu.memory_space<any>> -> memref<1x32xf32, #tpu.memory_space<any>>
    %c0_i32_2 = arith.constant 0 : i32
    %c0_i32_3 = arith.constant 0 : i32
    %5 = tpu.memref_slice %arg8[%c0_i32_2, %c0_i32_3] : memref<8x32xf32, #tpu.memory_space<vmem>> -> memref<1x32xf32, #tpu.memory_space<vmem>>
    %6 = tpu.memref_slice %arg9[%c0_i32_0] : memref<8x!tpu.dma_semaphore, #tpu.memory_space<semaphore_mem>> -> memref<1x!tpu.dma_semaphore, #tpu.memory_space<semaphore_mem>>
    %7 = tpu.memref_squeeze %6 : memref<1x!tpu.dma_semaphore, #tpu.memory_space<semaphore_mem>> -> memref<!tpu.dma_semaphore, #tpu.memory_space<semaphore_mem>>
    tpu.enqueue_dma source(%4 : memref<1x32xf32, #tpu.memory_space<any>>) target(%5 : memref<1x32xf32, #tpu.memory_space<vmem>>) target_semaphore(%7 : memref<!tpu.dma_semaphore, #tpu.memory_space<semaphore_mem>>)
    %c1_i32 = arith.constant 1 : i32
    %8 = arith.addi %0, %c1_i32 : i32
    %9 = arith.index_cast %8 : i32 to index
    %10 = memref.load %arg1[%9] : memref<8xi32, #tpu.memory_space<smem>>
    %c1_i32_4 = arith.constant 1 : i32
    %c0_i32_5 = arith.constant 0 : i32
    %11 = tpu.memref_slice %arg2[%10, %c0_i32_5] : memref<1000x32xf32, #tpu.memory_space<any>> -> memref<1x32xf32, #tpu.memory_space<any>>
    %c1_i32_6 = arith.constant 1 : i32
    %c0_i32_7 = arith.constant 0 : i32
    %12 = tpu.memref_slice %arg8[%c1_i32_6, %c0_i32_7] : memref<8x32xf32, #tpu.memory_space<vmem>> -> memref<1x32xf32, #tpu.memory_space<vmem>>
    %13 = tpu.memref_slice %arg9[%c1_i32_4] : memref<8x!tpu.dma_semaphore, #tpu.memory_space<semaphore_mem>> -> memref<1x!tpu.dma_semaphore, #tpu.memory_space<semaphore_mem>>
    %14 = tpu.memref_squeeze %13 : memref<1x!tpu.dma_semaphore, #tpu.memory_space<semaphore_mem>> -> memref<!tpu.dma_semaphore, #tpu.memory_space<semaphore_mem>>
    tpu.enqueue_dma source(%11 : memref<1x32xf32, #tpu.memory_space<any>>) target(%12 : memref<1x32xf32, #tpu.memory_space<vmem>>) target_semaphore(%14 : memref<!tpu.dma_semaphore, #tpu.memory_space<semaphore_mem>>)
    %c2_i32 = arith.constant 2 : i32
    %15 = arith.addi %0, %c2_i32 : i32
    %16 = arith.index_cast %15 : i32 to index
    %17 = memref.load %arg1[%16] : memref<8xi32, #tpu.memory_space<smem>>
    %c2_i32_8 = arith.constant 2 : i32
    %c0_i32_9 = arith.constant 0 : i32
    %18 = tpu.memref_slice %arg2[%17, %c0_i32_9] : memref<1000x32xf32, #tpu.memory_space<any>> -> memref<1x32xf32, #tpu.memory_space<any>>
    %c2_i32_10 = arith.constant 2 : i32
    %c0_i32_11 = arith.constant 0 : i32
    %19 = tpu.memref_slice %arg8[%c2_i32_10, %c0_i32_11] : memref<8x32xf32, #tpu.memory_space<vmem>> -> memref<1x32xf32, #tpu.memory_space<vmem>>
    %20 = tpu.memref_slice %arg9[%c2_i32_8] : memref<8x!tpu.dma_semaphore, #tpu.memory_space<semaphore_mem>> -> memref<1x!tpu.dma_semaphore, #tpu.memory_space<semaphore_mem>>
    %21 = tpu.memref_squeeze %20 : memref<1x!tpu.dma_semaphore, #tpu.memory_space<semaphore_mem>> -> memref<!tpu.dma_semaphore, #tpu.memory_space<semaphore_mem>>
    tpu.enqueue_dma source(%18 : memref<1x32xf32, #tpu.memory_space<any>>) target(%19 : memref<1x32xf32, #tpu.memory_space<vmem>>) target_semaphore(%21 : memref<!tpu.dma_semaphore, #tpu.memory_space<semaphore_mem>>)
    %c3_i32 = arith.constant 3 : i32
    %22 = arith.addi %0, %c3_i32 : i32
    %23 = arith.index_cast %22 : i32 to index
    %24 = memref.load %arg1[%23] : memref<8xi32, #tpu.memory_space<smem>>
    %c3_i32_12 = arith.constant 3 : i32
    %c0_i32_13 = arith.constant 0 : i32
    %25 = tpu.memref_slice %arg2[%24, %c0_i32_13] : memref<1000x32xf32, #tpu.memory_space<any>> -> memref<1x32xf32, #tpu.memory_space<any>>
    %c3_i32_14 = arith.constant 3 : i32
    %c0_i32_15 = arith.constant 0 : i32
    %26 = tpu.memref_slice %arg8[%c3_i32_14, %c0_i32_15] : memref<8x32xf32, #tpu.memory_space<vmem>> -> memref<1x32xf32, #tpu.memory_space<vmem>>
    %27 = tpu.memref_slice %arg9[%c3_i32_12] : memref<8x!tpu.dma_semaphore, #tpu.memory_space<semaphore_mem>> -> memref<1x!tpu.dma_semaphore, #tpu.memory_space<semaphore_mem>>
    %28 = tpu.memref_squeeze %27 : memref<1x!tpu.dma_semaphore, #tpu.memory_space<semaphore_mem>> -> memref<!tpu.dma_semaphore, #tpu.memory_space<semaphore_mem>>
    tpu.enqueue_dma source(%25 : memref<1x32xf32, #tpu.memory_space<any>>) target(%26 : memref<1x32xf32, #tpu.memory_space<vmem>>) target_semaphore(%28 : memref<!tpu.dma_semaphore, #tpu.memory_space<semaphore_mem>>)
    %c4_i32 = arith.constant 4 : i32
    %29 = arith.addi %0, %c4_i32 : i32
    %30 = arith.index_cast %29 : i32 to index
    %31 = memref.load %arg1[%30] : memref<8xi32, #tpu.memory_space<smem>>
    %c4_i32_16 = arith.constant 4 : i32
    %c0_i32_17 = arith.constant 0 : i32
    %32 = tpu.memref_slice %arg2[%31, %c0_i32_17] : memref<1000x32xf32, #tpu.memory_space<any>> -> memref<1x32xf32, #tpu.memory_space<any>>
    %c4_i32_18 = arith.constant 4 : i32
    %c0_i32_19 = arith.constant 0 : i32
    %33 = tpu.memref_slice %arg8[%c4_i32_18, %c0_i32_19] : memref<8x32xf32, #tpu.memory_space<vmem>> -> memref<1x32xf32, #tpu.memory_space<vmem>>
    %34 = tpu.memref_slice %arg9[%c4_i32_16] : memref<8x!tpu.dma_semaphore, #tpu.memory_space<semaphore_mem>> -> memref<1x!tpu.dma_semaphore, #tpu.memory_space<semaphore_mem>>
    %35 = tpu.memref_squeeze %34 : memref<1x!tpu.dma_semaphore, #tpu.memory_space<semaphore_mem>> -> memref<!tpu.dma_semaphore, #tpu.memory_space<semaphore_mem>>
    tpu.enqueue_dma source(%32 : memref<1x32xf32, #tpu.memory_space<any>>) target(%33 : memref<1x32xf32, #tpu.memory_space<vmem>>) target_semaphore(%35 : memref<!tpu.dma_semaphore, #tpu.memory_space<semaphore_mem>>)
    %c5_i32 = arith.constant 5 : i32
    %36 = arith.addi %0, %c5_i32 : i32
    %37 = arith.index_cast %36 : i32 to index
    %38 = memref.load %arg1[%37] : memref<8xi32, #tpu.memory_space<smem>>
    %c5_i32_20 = arith.constant 5 : i32
    %c0_i32_21 = arith.constant 0 : i32
    %39 = tpu.memref_slice %arg2[%38, %c0_i32_21] : memref<1000x32xf32, #tpu.memory_space<any>> -> memref<1x32xf32, #tpu.memory_space<any>>
    %c5_i32_22 = arith.constant 5 : i32
    %c0_i32_23 = arith.constant 0 : i32
    %40 = tpu.memref_slice %arg8[%c5_i32_22, %c0_i32_23] : memref<8x32xf32, #tpu.memory_space<vmem>> -> memref<1x32xf32, #tpu.memory_space<vmem>>
    %41 = tpu.memref_slice %arg9[%c5_i32_20] : memref<8x!tpu.dma_semaphore, #tpu.memory_space<semaphore_mem>> -> memref<1x!tpu.dma_semaphore, #tpu.memory_space<semaphore_mem>>
    %42 = tpu.memref_squeeze %41 : memref<1x!tpu.dma_semaphore, #tpu.memory_space<semaphore_mem>> -> memref<!tpu.dma_semaphore, #tpu.memory_space<semaphore_mem>>
    tpu.enqueue_dma source(%39 : memref<1x32xf32, #tpu.memory_space<any>>) target(%40 : memref<1x32xf32, #tpu.memory_space<vmem>>) target_semaphore(%42 : memref<!tpu.dma_semaphore, #tpu.memory_space<semaphore_mem>>)
    %c6_i32 = arith.constant 6 : i32
    %43 = arith.addi %0, %c6_i32 : i32
    %44 = arith.index_cast %43 : i32 to index
    %45 = memref.load %arg1[%44] : memref<8xi32, #tpu.memory_space<smem>>
    %c6_i32_24 = arith.constant 6 : i32
    %c0_i32_25 = arith.constant 0 : i32
    %46 = tpu.memref_slice %arg2[%45, %c0_i32_25] : memref<1000x32xf32, #tpu.memory_space<any>> -> memref<1x32xf32, #tpu.memory_space<any>>
    %c6_i32_26 = arith.constant 6 : i32
    %c0_i32_27 = arith.constant 0 : i32
    %47 = tpu.memref_slice %arg8[%c6_i32_26, %c0_i32_27] : memref<8x32xf32, #tpu.memory_space<vmem>> -> memref<1x32xf32, #tpu.memory_space<vmem>>
    %48 = tpu.memref_slice %arg9[%c6_i32_24] : memref<8x!tpu.dma_semaphore, #tpu.memory_space<semaphore_mem>> -> memref<1x!tpu.dma_semaphore, #tpu.memory_space<semaphore_mem>>
    %49 = tpu.memref_squeeze %48 : memref<1x!tpu.dma_semaphore, #tpu.memory_space<semaphore_mem>> -> memref<!tpu.dma_semaphore, #tpu.memory_space<semaphore_mem>>
    tpu.enqueue_dma source(%46 : memref<1x32xf32, #tpu.memory_space<any>>) target(%47 : memref<1x32xf32, #tpu.memory_space<vmem>>) target_semaphore(%49 : memref<!tpu.dma_semaphore, #tpu.memory_space<semaphore_mem>>)
    %c7_i32 = arith.constant 7 : i32
    %50 = arith.addi %0, %c7_i32 : i32
    %51 = arith.index_cast %50 : i32 to index
    %52 = memref.load %arg1[%51] : memref<8xi32, #tpu.memory_space<smem>>
    %c7_i32_28 = arith.constant 7 : i32
    %c0_i32_29 = arith.constant 0 : i32
    %53 = tpu.memref_slice %arg2[%52, %c0_i32_29] : memref<1000x32xf32, #tpu.memory_space<any>> -> memref<1x32xf32, #tpu.memory_space<any>>
    %c7_i32_30 = arith.constant 7 : i32
    %c0_i32_31 = arith.constant 0 : i32
    %54 = tpu.memref_slice %arg8[%c7_i32_30, %c0_i32_31] : memref<8x32xf32, #tpu.memory_space<vmem>> -> memref<1x32xf32, #tpu.memory_space<vmem>>
    %55 = tpu.memref_slice %arg9[%c7_i32_28] : memref<8x!tpu.dma_semaphore, #tpu.memory_space<semaphore_mem>> -> memref<1x!tpu.dma_semaphore, #tpu.memory_space<semaphore_mem>>
    %56 = tpu.memref_squeeze %55 : memref<1x!tpu.dma_semaphore, #tpu.memory_space<semaphore_mem>> -> memref<!tpu.dma_semaphore, #tpu.memory_space<semaphore_mem>>
    tpu.enqueue_dma source(%53 : memref<1x32xf32, #tpu.memory_space<any>>) target(%54 : memref<1x32xf32, #tpu.memory_space<vmem>>) target_semaphore(%56 : memref<!tpu.dma_semaphore, #tpu.memory_space<semaphore_mem>>)
    %c0_i32_32 = arith.constant 0 : i32
    %c0_i32_33 = arith.constant 0 : i32
    %c0_i32_34 = arith.constant 0 : i32
    %57 = tpu.memref_slice %arg2[%c0_i32_33, %c0_i32_34] : memref<1000x32xf32, #tpu.memory_space<any>> -> memref<1x32xf32, #tpu.memory_space<any>>
    %c0_i32_35 = arith.constant 0 : i32
    %c0_i32_36 = arith.constant 0 : i32
    %58 = tpu.memref_slice %arg8[%c0_i32_35, %c0_i32_36] : memref<8x32xf32, #tpu.memory_space<vmem>> -> memref<1x32xf32, #tpu.memory_space<vmem>>
    %59 = tpu.memref_slice %arg9[%c0_i32_32] : memref<8x!tpu.dma_semaphore, #tpu.memory_space<semaphore_mem>> -> memref<1x!tpu.dma_semaphore, #tpu.memory_space<semaphore_mem>>
    %60 = tpu.memref_squeeze %59 : memref<1x!tpu.dma_semaphore, #tpu.memory_space<semaphore_mem>> -> memref<!tpu.dma_semaphore, #tpu.memory_space<semaphore_mem>>
    tpu.wait_dma2 semaphore(%60 : memref<!tpu.dma_semaphore, #tpu.memory_space<semaphore_mem>>) src(%57 : memref<1x32xf32, #tpu.memory_space<any>>) dst(%58 : memref<1x32xf32, #tpu.memory_space<vmem>>)
    %c1_i32_37 = arith.constant 1 : i32
    %c0_i32_38 = arith.constant 0 : i32
    %c0_i32_39 = arith.constant 0 : i32
    %61 = tpu.memref_slice %arg2[%c0_i32_38, %c0_i32_39] : memref<1000x32xf32, #tpu.memory_space<any>> -> memref<1x32xf32, #tpu.memory_space<any>>
    %c1_i32_40 = arith.constant 1 : i32
    %c0_i32_41 = arith.constant 0 : i32
    %62 = tpu.memref_slice %arg8[%c1_i32_40, %c0_i32_41] : memref<8x32xf32, #tpu.memory_space<vmem>> -> memref<1x32xf32, #tpu.memory_space<vmem>>
    %63 = tpu.memref_slice %arg9[%c1_i32_37] : memref<8x!tpu.dma_semaphore, #tpu.memory_space<semaphore_mem>> -> memref<1x!tpu.dma_semaphore, #tpu.memory_space<semaphore_mem>>
    %64 = tpu.memref_squeeze %63 : memref<1x!tpu.dma_semaphore, #tpu.memory_space<semaphore_mem>> -> memref<!tpu.dma_semaphore, #tpu.memory_space<semaphore_mem>>
    tpu.wait_dma2 semaphore(%64 : memref<!tpu.dma_semaphore, #tpu.memory_space<semaphore_mem>>) src(%61 : memref<1x32xf32, #tpu.memory_space<any>>) dst(%62 : memref<1x32xf32, #tpu.memory_space<vmem>>)
    %c2_i32_42 = arith.constant 2 : i32
    %c0_i32_43 = arith.constant 0 : i32
    %c0_i32_44 = arith.constant 0 : i32
    %65 = tpu.memref_slice %arg2[%c0_i32_43, %c0_i32_44] : memref<1000x32xf32, #tpu.memory_space<any>> -> memref<1x32xf32, #tpu.memory_space<any>>
    %c2_i32_45 = arith.constant 2 : i32
    %c0_i32_46 = arith.constant 0 : i32
    %66 = tpu.memref_slice %arg8[%c2_i32_45, %c0_i32_46] : memref<8x32xf32, #tpu.memory_space<vmem>> -> memref<1x32xf32, #tpu.memory_space<vmem>>
    %67 = tpu.memref_slice %arg9[%c2_i32_42] : memref<8x!tpu.dma_semaphore, #tpu.memory_space<semaphore_mem>> -> memref<1x!tpu.dma_semaphore, #tpu.memory_space<semaphore_mem>>
    %68 = tpu.memref_squeeze %67 : memref<1x!tpu.dma_semaphore, #tpu.memory_space<semaphore_mem>> -> memref<!tpu.dma_semaphore, #tpu.memory_space<semaphore_mem>>
    tpu.wait_dma2 semaphore(%68 : memref<!tpu.dma_semaphore, #tpu.memory_space<semaphore_mem>>) src(%65 : memref<1x32xf32, #tpu.memory_space<any>>) dst(%66 : memref<1x32xf32, #tpu.memory_space<vmem>>)
    %c3_i32_47 = arith.constant 3 : i32
    %c0_i32_48 = arith.constant 0 : i32
    %c0_i32_49 = arith.constant 0 : i32
    %69 = tpu.memref_slice %arg2[%c0_i32_48, %c0_i32_49] : memref<1000x32xf32, #tpu.memory_space<any>> -> memref<1x32xf32, #tpu.memory_space<any>>
    %c3_i32_50 = arith.constant 3 : i32
    %c0_i32_51 = arith.constant 0 : i32
    %70 = tpu.memref_slice %arg8[%c3_i32_50, %c0_i32_51] : memref<8x32xf32, #tpu.memory_space<vmem>> -> memref<1x32xf32, #tpu.memory_space<vmem>>
    %71 = tpu.memref_slice %arg9[%c3_i32_47] : memref<8x!tpu.dma_semaphore, #tpu.memory_space<semaphore_mem>> -> memref<1x!tpu.dma_semaphore, #tpu.memory_space<semaphore_mem>>
    %72 = tpu.memref_squeeze %71 : memref<1x!tpu.dma_semaphore, #tpu.memory_space<semaphore_mem>> -> memref<!tpu.dma_semaphore, #tpu.memory_space<semaphore_mem>>
    tpu.wait_dma2 semaphore(%72 : memref<!tpu.dma_semaphore, #tpu.memory_space<semaphore_mem>>) src(%69 : memref<1x32xf32, #tpu.memory_space<any>>) dst(%70 : memref<1x32xf32, #tpu.memory_space<vmem>>)
    %c4_i32_52 = arith.constant 4 : i32
    %c0_i32_53 = arith.constant 0 : i32
    %c0_i32_54 = arith.constant 0 : i32
    %73 = tpu.memref_slice %arg2[%c0_i32_53, %c0_i32_54] : memref<1000x32xf32, #tpu.memory_space<any>> -> memref<1x32xf32, #tpu.memory_space<any>>
    %c4_i32_55 = arith.constant 4 : i32
    %c0_i32_56 = arith.constant 0 : i32
    %74 = tpu.memref_slice %arg8[%c4_i32_55, %c0_i32_56] : memref<8x32xf32, #tpu.memory_space<vmem>> -> memref<1x32xf32, #tpu.memory_space<vmem>>
    %75 = tpu.memref_slice %arg9[%c4_i32_52] : memref<8x!tpu.dma_semaphore, #tpu.memory_space<semaphore_mem>> -> memref<1x!tpu.dma_semaphore, #tpu.memory_space<semaphore_mem>>
    %76 = tpu.memref_squeeze %75 : memref<1x!tpu.dma_semaphore, #tpu.memory_space<semaphore_mem>> -> memref<!tpu.dma_semaphore, #tpu.memory_space<semaphore_mem>>
    tpu.wait_dma2 semaphore(%76 : memref<!tpu.dma_semaphore, #tpu.memory_space<semaphore_mem>>) src(%73 : memref<1x32xf32, #tpu.memory_space<any>>) dst(%74 : memref<1x32xf32, #tpu.memory_space<vmem>>)
    %c5_i32_57 = arith.constant 5 : i32
    %c0_i32_58 = arith.constant 0 : i32
    %c0_i32_59 = arith.constant 0 : i32
    %77 = tpu.memref_slice %arg2[%c0_i32_58, %c0_i32_59] : memref<1000x32xf32, #tpu.memory_space<any>> -> memref<1x32xf32, #tpu.memory_space<any>>
    %c5_i32_60 = arith.constant 5 : i32
    %c0_i32_61 = arith.constant 0 : i32
    %78 = tpu.memref_slice %arg8[%c5_i32_60, %c0_i32_61] : memref<8x32xf32, #tpu.memory_space<vmem>> -> memref<1x32xf32, #tpu.memory_space<vmem>>
    %79 = tpu.memref_slice %arg9[%c5_i32_57] : memref<8x!tpu.dma_semaphore, #tpu.memory_space<semaphore_mem>> -> memref<1x!tpu.dma_semaphore, #tpu.memory_space<semaphore_mem>>
    %80 = tpu.memref_squeeze %79 : memref<1x!tpu.dma_semaphore, #tpu.memory_space<semaphore_mem>> -> memref<!tpu.dma_semaphore, #tpu.memory_space<semaphore_mem>>
    tpu.wait_dma2 semaphore(%80 : memref<!tpu.dma_semaphore, #tpu.memory_space<semaphore_mem>>) src(%77 : memref<1x32xf32, #tpu.memory_space<any>>) dst(%78 : memref<1x32xf32, #tpu.memory_space<vmem>>)
    %c6_i32_62 = arith.constant 6 : i32
    %c0_i32_63 = arith.constant 0 : i32
    %c0_i32_64 = arith.constant 0 : i32
    %81 = tpu.memref_slice %arg2[%c0_i32_63, %c0_i32_64] : memref<1000x32xf32, #tpu.memory_space<any>> -> memref<1x32xf32, #tpu.memory_space<any>>
    %c6_i32_65 = arith.constant 6 : i32
    %c0_i32_66 = arith.constant 0 : i32
    %82 = tpu.memref_slice %arg8[%c6_i32_65, %c0_i32_66] : memref<8x32xf32, #tpu.memory_space<vmem>> -> memref<1x32xf32, #tpu.memory_space<vmem>>
    %83 = tpu.memref_slice %arg9[%c6_i32_62] : memref<8x!tpu.dma_semaphore, #tpu.memory_space<semaphore_mem>> -> memref<1x!tpu.dma_semaphore, #tpu.memory_space<semaphore_mem>>
    %84 = tpu.memref_squeeze %83 : memref<1x!tpu.dma_semaphore, #tpu.memory_space<semaphore_mem>> -> memref<!tpu.dma_semaphore, #tpu.memory_space<semaphore_mem>>
    tpu.wait_dma2 semaphore(%84 : memref<!tpu.dma_semaphore, #tpu.memory_space<semaphore_mem>>) src(%81 : memref<1x32xf32, #tpu.memory_space<any>>) dst(%82 : memref<1x32xf32, #tpu.memory_space<vmem>>)
    %c7_i32_67 = arith.constant 7 : i32
    %c0_i32_68 = arith.constant 0 : i32
    %c0_i32_69 = arith.constant 0 : i32
    %85 = tpu.memref_slice %arg2[%c0_i32_68, %c0_i32_69] : memref<1000x32xf32, #tpu.memory_space<any>> -> memref<1x32xf32, #tpu.memory_space<any>>
    %c7_i32_70 = arith.constant 7 : i32
    %c0_i32_71 = arith.constant 0 : i32
    %86 = tpu.memref_slice %arg8[%c7_i32_70, %c0_i32_71] : memref<8x32xf32, #tpu.memory_space<vmem>> -> memref<1x32xf32, #tpu.memory_space<vmem>>
    %87 = tpu.memref_slice %arg9[%c7_i32_67] : memref<8x!tpu.dma_semaphore, #tpu.memory_space<semaphore_mem>> -> memref<1x!tpu.dma_semaphore, #tpu.memory_space<semaphore_mem>>
    %88 = tpu.memref_squeeze %87 : memref<1x!tpu.dma_semaphore, #tpu.memory_space<semaphore_mem>> -> memref<!tpu.dma_semaphore, #tpu.memory_space<semaphore_mem>>
    tpu.wait_dma2 semaphore(%88 : memref<!tpu.dma_semaphore, #tpu.memory_space<semaphore_mem>>) src(%85 : memref<1x32xf32, #tpu.memory_space<any>>) dst(%86 : memref<1x32xf32, #tpu.memory_space<vmem>>)
    %c0 = arith.constant 0 : index
    %c0_72 = arith.constant 0 : index
    %89 = vector.load %arg8[%c0, %c0_72] : memref<8x32xf32, #tpu.memory_space<vmem>>, vector<8x32xf32>
    %c0_73 = arith.constant 0 : index
    %c0_74 = arith.constant 0 : index
    %90 = vector.load %arg3[%c0_73, %c0_74] : memref<32x128xf32, #tpu.memory_space<vmem>>, vector<32x128xf32>
    %cst = arith.constant dense<0.000000e+00> : vector<8x128xf32>
    %91 = tpu.matmul %89, %90, %cst {dimension_numbers = #tpu.dot_dimension_numbers<[1], [0], [0], [1], [0, 0, 1, 1], [], []>} : vector<8x32xf32>, vector<32x128xf32>, vector<8x128xf32> -> vector<8x128xf32>
    %c0_75 = arith.constant 0 : index
    %c0_76 = arith.constant 0 : index
    %92 = vector.load %arg4[%c0_75, %c0_76] : memref<1x128xf32, #tpu.memory_space<vmem>>, vector<1x128xf32>
    %93 = vector.broadcast %92 : vector<1x128xf32> to vector<8x128xf32>
    %94 = arith.addf %91, %93 : vector<8x128xf32>
    %95 = arith.negf %94 : vector<8x128xf32>
    %96 = math.exp %95 : vector<8x128xf32>
    %cst_77 = arith.constant 1.000000e+00 : f32
    %97 = vector.broadcast %cst_77 : f32 to vector<8x128xf32>
    %98 = arith.addf %97, %96 : vector<8x128xf32>
    %99 = arith.divf %97, %98 : vector<8x128xf32>
    %100 = arith.mulf %94, %99 : vector<8x128xf32>
    %c0_78 = arith.constant 0 : index
    %c0_79 = arith.constant 0 : index
    %101 = vector.load %arg5[%c0_78, %c0_79] : memref<128x128xf32, #tpu.memory_space<vmem>>, vector<128x128xf32>
    %cst_80 = arith.constant dense<0.000000e+00> : vector<8x128xf32>
    %102 = tpu.matmul %100, %101, %cst_80 {dimension_numbers = #tpu.dot_dimension_numbers<[1], [0], [0], [1], [0, 0, 1, 1], [], []>} : vector<8x128xf32>, vector<128x128xf32>, vector<8x128xf32> -> vector<8x128xf32>
    %c0_81 = arith.constant 0 : index
    %c0_82 = arith.constant 0 : index
    %103 = vector.load %arg6[%c0_81, %c0_82] : memref<1x128xf32, #tpu.memory_space<vmem>>, vector<1x128xf32>
    %104 = vector.broadcast %103 : vector<1x128xf32> to vector<8x128xf32>
    %105 = arith.addf %102, %104 : vector<8x128xf32>
    %c0_83 = arith.constant 0 : index
    %c0_84 = arith.constant 0 : index
    %106 = vector.load %arg7[%c0_83, %c0_84] : memref<8x128xf32, #tpu.memory_space<vmem>>, vector<8x128xf32>
    tpu.vector_store %arg7[%c0_83, %c0_84], %105 {strides = array<i32>} : memref<8x128xf32, #tpu.memory_space<vmem>>, vector<8x128xf32>,
    return
  }
  func.func @transform_1(%arg0: i32, %arg1: memref<8xi32, #tpu.memory_space<smem>>) -> (i32, i32) {
    %c0_i32 = arith.constant 0 : i32
    %c0_i32_0 = arith.constant 0 : i32
    %c0_i32_1 = arith.constant 0 : i32
    return %c0_i32, %c0_i32_0 : i32, i32
  }
  func.func @transform_2(%arg0: i32, %arg1: memref<8xi32, #tpu.memory_space<smem>>) -> (i32, i32) {
    %c0_i32 = arith.constant 0 : i32
    %c0_i32_0 = arith.constant 0 : i32
    %c0_i32_1 = arith.constant 0 : i32
    return %c0_i32, %c0_i32_0 : i32, i32
  }
  func.func @transform_3(%arg0: i32, %arg1: memref<8xi32, #tpu.memory_space<smem>>) -> (i32, i32) {
    %c0_i32 = arith.constant 0 : i32
    %c0_i32_0 = arith.constant 0 : i32
    %c0_i32_1 = arith.constant 0 : i32
    return %c0_i32, %c0_i32_0 : i32, i32
  }
  func.func @transform_4(%arg0: i32, %arg1: memref<8xi32, #tpu.memory_space<smem>>) -> (i32, i32) {
    %c0_i32 = arith.constant 0 : i32
    %c0_i32_0 = arith.constant 0 : i32
    %c0_i32_1 = arith.constant 0 : i32
    return %c0_i32, %c0_i32_0 : i32, i32
  }
  func.func @transform_5(%arg0: i32, %arg1: memref<8xi32, #tpu.memory_space<smem>>) -> (i32, i32) {
    %c0_i32 = arith.constant 0 : i32
    %c0_i32_0 = arith.constant 0 : i32
    return %arg0, %c0_i32 : i32, i32
  }
}

</mosaic_0001>

<bundles_post_ra>
// kernel: time_embedding_projection.1
= control target key start
LH: loop header
LB: loop body
LE: loop exit
PB: predicated region body
PF: predicated region fallthrough
CT: control target
= control target key end

     0   :  { %s1104_s0 = inlined_call_operand.vmem [shape: s32[8], index: 0, kind: input, shape index: {}]   ;;  %s1105_s1 = inlined_call_operand.vmem [shape: f32[1000,32], index: 1, kind: input, shape index: {}]   ;;  %s1106_s2 = inlined_call_operand.vmem [shape: f32[32,128], index: 2, kind: input, shape index: {}]   ;;  %s1107_s3 = inlined_call_operand.vmem [shape: f32[1,128], index: 3, kind: input, shape index: {}]   ;;  %s1108_s4 = inlined_call_operand.vmem [shape: f32[128,128], index: 4, kind: input, shape index: {}]   ;;  %s1109_s5 = inlined_call_operand.vmem [shape: f32[1,128], index: 5, kind: input, shape index: {}]   ;;  %s1110_s6 = inlined_call_operand.hbm [shape: f32[8,128], index: 6, kind: output, shape index: {}]  }
   0x1   :  { %s11_s23 = sshll.u32 %s1104_s0, 4  ;;  %s12_s23 = int_to_ptr.vmem [resolvable:$true] %s11_s23 }
   0x2   :  { %s895_s24 = scalar_lea.vmem %s12_s23, 16  ;;  %p900_p1 = scmp.lt.s32.totalorder %s12_s23, %s12_s23 }
   0x3   :  { %p896_p0 = scmp.ne.s32.totalorder %s12_s23, %s895_s24  ;;  %p901_p2 = scmp.lt.s32.totalorder %s895_s24, %s895_s24 }
   0x5   :  { %p902_p3 = por %p901_p2, %p900_p1 }
   0x7   :  { %p903_p4 = pnand %p902_p3, %p896_p0 }
   0x9   :  { %906 = shalt.err (!%p903_p4)  }
   0xa   :  { %s947_s25 = smov [#allocation5]  }
   0xb   :  { %14 = dma.vmem_to_smem %s12_s23, 16, %s947_s25, [#allocation4] }
   0xc   :  { %927 = dma.done.wait [#allocation4], 16 }
   0xd   :  { %928 = vsyncadd [#allocation4], 4294967280 }
   0xe   :  { %16 = sfence }
   0xf   :  { %17 = vsyncpa [#allocation7], 0  ;;  %s27_s26 = sld [smem:[#allocation5]] }
  0x15   :  { %s28_s29 = scalar_lea.vmem %s1105_s1, %s27_s26 }
  0x16   :  { %v47_v0 = vld [vmem:[%s28_s29] sm:$0x1] }
  0x17   :  { %48 = vst [vmem:[#allocation2] sm:$0x1] %v47_v0 }
  0x18   :  { %74 = vsyncadd [#allocation3], 16  ;;  %s800_s0 = sld [smem:[#allocation5 + $0x1]] }
  0x1e   :  { %s77_s8 = scalar_lea.vmem %s1105_s1, %s800_s0 }
  0x1f   :  { %v98_v1 = vld [vmem:[%s77_s8] sm:$0x1] }
  0x20   :  { %99 = vst [vmem:[#allocation2 + $0x1] sm:$0x1] %v98_v1 }
  0x21   :  { %125 = vsyncadd [#allocation3 + $0x1], 16  ;;  %s801_s9 = sld [smem:[#allocation5 + $0x2]] }
  0x27   :  { %s128_s12 = scalar_lea.vmem %s1105_s1, %s801_s9 }
  0x28   :  { %v149_v2 = vld [vmem:[%s128_s12] sm:$0x1] }
  0x29   :  { %150 = vst [vmem:[#allocation2 + $0x2] sm:$0x1] %v149_v2 }
  0x2a   :  { %176 = vsyncadd [#allocation3 + $0x2], 16  ;;  %s802_s13 = sld [smem:[#allocation5 + $0x3]] }
  0x30   :  { %s179_s16 = scalar_lea.vmem %s1105_s1, %s802_s13 }
  0x31   :  { %v200_v3 = vld [vmem:[%s179_s16] sm:$0x1] }
  0x32   :  { %201 = vst [vmem:[#allocation2 + $0x3] sm:$0x1] %v200_v3 }
  0x33   :  { %227 = vsyncadd [#allocation3 + $0x3], 16  ;;  %s803_s17 = sld [smem:[#allocation5 + $0x4]] }
  0x39   :  { %s230_s20 = scalar_lea.vmem %s1105_s1, %s803_s17 }
  0x3a   :  { %v251_v4 = vld [vmem:[%s230_s20] sm:$0x1] }
  0x3b   :  { %252 = vst [vmem:[#allocation2 + $0x4] sm:$0x1] %v251_v4 }
  0x3c   :  { %278 = vsyncadd [#allocation3 + $0x4], 16  ;;  %s804_s21 = sld [smem:[#allocation5 + $0x5]] }
  0x42   :  { %s281_s24 = scalar_lea.vmem %s1105_s1, %s804_s21 }
  0x43   :  { %v302_v5 = vld [vmem:[%s281_s24] sm:$0x1] }
  0x44   :  { %303 = vst [vmem:[#allocation2 + $0x5] sm:$0x1] %v302_v5 }
  0x45   :  { %329 = vsyncadd [#allocation3 + $0x5], 16  ;;  %s805_s25 = sld [smem:[#allocation5 + $0x6]] }
  0x4b   :  { %s332_s28 = scalar_lea.vmem %s1105_s1, %s805_s25 }
  0x4c   :  { %v353_v6 = vld [vmem:[%s332_s28] sm:$0x1] }
  0x4d   :  { %354 = vst [vmem:[#allocation2 + $0x6] sm:$0x1] %v353_v6 }
  0x4e   :  { %380 = vsyncadd [#allocation3 + $0x6], 16  ;;  %s806_s29 = sld [smem:[#allocation5 + $0x7]] }
  0x54   :  { %s383_s7 = scalar_lea.vmem %s1105_s1, %s806_s29 }
  0x55   :  { %v404_v7 = vld [vmem:[%s383_s7] sm:$0x1] }
  0x56   :  { %405 = vst [vmem:[#allocation2 + $0x7] sm:$0x1] %v404_v7 }
  0x57   :  { %431 = vsyncadd [#allocation3 + $0x7], 16 }
  0x58   :  { %929 = dma.done.wait [#allocation3], 16 }
  0x59   :  { %930 = vsyncadd [#allocation3], 4294967280 }
  0x5a   :  { %931 = dma.done.wait [#allocation3 + $0x1], 16 }
  0x5b   :  { %932 = vsyncadd [#allocation3 + $0x1], 4294967280 }
  0x5c   :  { %933 = dma.done.wait [#allocation3 + $0x2], 16 }
  0x5d   :  { %934 = vsyncadd [#allocation3 + $0x2], 4294967280 }
  0x5e   :  { %935 = dma.done.wait [#allocation3 + $0x3], 16 }
  0x5f   :  { %936 = vsyncadd [#allocation3 + $0x3], 4294967280 }
  0x60   :  { %937 = dma.done.wait [#allocation3 + $0x4], 16 }
  0x61   :  { %938 = vsyncadd [#allocation3 + $0x4], 4294967280 }
  0x62   :  { %939 = dma.done.wait [#allocation3 + $0x5], 16 }
  0x63   :  { %940 = vsyncadd [#allocation3 + $0x5], 4294967280 }
  0x64   :  { %941 = dma.done.wait [#allocation3 + $0x6], 16 }
  0x65   :  { %942 = vsyncadd [#allocation3 + $0x6], 4294967280 }
  0x66   :  { %943 = dma.done.wait [#allocation3 + $0x7], 16 }
  0x67   :  { %944 = vsyncadd [#allocation3 + $0x7], 4294967280  ;;  %v948_v8 = vmov 0.0   ;;  %vm949_vm0 = vmmov 0   ;;  %v453_v9 = vld [vmem:[%s1106_s2 + $0x18] sm:$0xff]  ;;  %v452_v10 = vld [vmem:[%s1106_s2 + $0x10] sm:$0xff] }
  0x68   :  { %841 = vmatprep.subr.mxu0 %v948_v8  ;;  %849 = vmatprep.mubr.msk.f32.mxu0 %vm949_vm0, %v948_v8  ;;  %v451_v11 = vld [vmem:[%s1106_s2 + $0x8] sm:$0xff]  ;;  %v450_v12 = vld [vmem:[%s1106_s2] sm:$0xff]  ;;  %vm461_vm1 = vcmask 261120   ;;  %v557_v14 = vld [vmem:[%s1108_s4 + $0x78] sm:$0xff] }
  0x69   :  { %852 = vmatprep.subr.mxu1 %v948_v8  ;;  %884 = vmatprep.mubr.msk.f32.mxu1 %vm949_vm0, %v948_v8  ;;  %v449_v13 = vld [vmem:[#allocation2] sm:$0xff]  ;;  %v556_v15 = vld [vmem:[%s1108_s4 + $0x70] sm:$0xff]  ;;  %v555_v16 = vld [vmem:[%s1108_s4 + $0x68] sm:$0xff] }
  0x6a   :  { %842 = vmatpush3.msra.mxu0 %v453_v9  ;;  %853 = vmatpush3.msra.mxu1 %v557_v14  ;;  %v554_v17 = vld [vmem:[%s1108_s4 + $0x60] sm:$0xff]  ;;  %v553_v18 = vld [vmem:[%s1108_s4 + $0x58] sm:$0xff]  ;;  %v552_v19 = vld [vmem:[%s1108_s4 + $0x50] sm:$0xff] }
  0x6b   :  { %843 = vmatprep.subr.mxu0 %v948_v8  ;;  %854 = vmatprep.subr.mxu1 %v948_v8  ;;  %v551_v20 = vld [vmem:[%s1108_s4 + $0x48] sm:$0xff]  ;;  %v550_v21 = vld [vmem:[%s1108_s4 + $0x40] sm:$0xff]  ;;  %v549_v22 = vld [vmem:[%s1108_s4 + $0x38] sm:$0xff] }
  0x6c   :  { %844 = vmatpush3.msra.mxu0 %v452_v10  ;;  %855 = vmatpush3.msra.mxu1 %v556_v15  ;;  %v548_v23 = vld [vmem:[%s1108_s4 + $0x30] sm:$0xff]  ;;  %v547_v24 = vld [vmem:[%s1108_s4 + $0x28] sm:$0xff]  ;;  %v546_v25 = vld [vmem:[%s1108_s4 + $0x20] sm:$0xff] }
  0x6d   :  { %845 = vmatprep.subr.mxu0 %v948_v8  ;;  %856 = vmatprep.subr.mxu1 %v948_v8  ;;  %v545_v26 = vld [vmem:[%s1108_s4 + $0x18] sm:$0xff]  ;;  %v544_v27 = vld [vmem:[%s1108_s4 + $0x10] sm:$0xff]  ;;  %v543_v28 = vld [vmem:[%s1108_s4 + $0x8] sm:$0xff] }
  0x6e   :  { %846 = vmatpush3.msra.mxu0 %v451_v11  ;;  %857 = vmatpush3.msra.mxu1 %v555_v16  ;;  %v542_v29 = vld [vmem:[%s1108_s4] sm:$0xff]  ;;  %s950_s4 = smov [#allocation6]  }
  0x6f   :  { %847 = vmatprep.subr.mxu0 %v948_v8  ;;  %858 = vmatprep.subr.mxu1 %v948_v8  ;;  %v807_v30 = vld [vmem:[%s1107_s3] ss:$0 sm:$0xff]  ;;  %s642_s23 = sshll.u32 %s950_s4, 4  ;;  %s643_s23 = int_to_ptr.vmem [resolvable:$true] %s642_s23 }
  0x70   :  { %848 = vmatpush3.msra.mxu0 %v450_v12  ;;  %859 = vmatpush3.msra.mxu1 %v554_v17  ;;  %v810_v39 = vld [vmem:[%s1109_s5] ss:$0 sm:$0xff]  ;;  %s907_s3 = scalar_lea.vmem %s643_s23, 128  ;;  %p912_p6 = scmp.lt.s32.totalorder %s643_s23, %s643_s23 }
  0x71   :  { %850 = vmatmul.mubr.msk.f32.vlgmr.msra.gmra.mxu0 %vm461_vm1, %v449_v13  ;;  %860 = vmatprep.subr.mxu1 %v948_v8  ;;  %p908_p5 = scmp.ne.s32.totalorder %s643_s23, %s907_s3  ;;  %p913_p7 = scmp.lt.s32.totalorder %s907_s3, %s907_s3 }
  0x72   :  { %861 = vmatpush3.msra.mxu1 %v553_v18 }
  0x73   :  { %862 = vmatprep.subr.mxu1 %v948_v8  ;;  %p914_p8 = por %p913_p7, %p912_p6 }
  0x74   :  { %863 = vmatpush3.msra.mxu1 %v552_v19 }
  0x75   :  { %864 = vmatprep.subr.mxu1 %v948_v8  ;;  %p915_p9 = pnand %p914_p8, %p908_p5 }
  0x76   :  { %865 = vmatpush3.msra.mxu1 %v551_v20 }
  0x77   :  { %866 = vmatprep.subr.mxu1 %v948_v8 }
  0x78   :  { %867 = vmatpush3.msra.mxu1 %v550_v21 }
  0x79   :  { %868 = vmatprep.subr.mxu1 %v948_v8 }
  0x7a   :  { %869 = vmatpush3.msra.mxu1 %v549_v22 }
  0x7b   :  { %870 = vmatprep.subr.mxu1 %v948_v8 }
  0x7c   :  { %871 = vmatpush3.msra.mxu1 %v548_v23 }
  0x7d   :  { %872 = vmatprep.subr.mxu1 %v948_v8 }
  0x7e   :  { %873 = vmatpush3.msra.mxu1 %v547_v24 }
  0x7f   :  { %874 = vmatprep.subr.mxu1 %v948_v8 }
  0x80   :  { %875 = vmatpush3.msra.mxu1 %v546_v25 }
  0x81   :  { %876 = vmatprep.subr.mxu1 %v948_v8 }
  0x82   :  { %877 = vmatpush3.msra.mxu1 %v545_v26 }
  0x83   :  { %878 = vmatprep.subr.mxu1 %v948_v8 }
  0x84   :  { %879 = vmatpush3.msra.mxu1 %v544_v27 }
  0x85   :  { %880 = vmatprep.subr.mxu1 %v948_v8 }
  0x86   :  { %881 = vmatpush3.msra.mxu1 %v543_v28 }
  0x87   :  { %882 = vmatprep.subr.mxu1 %v948_v8 }
  0x88   :  { %883 = vmatpush3.msra.mxu1 %v542_v29 }
 0x131   :  { %v531_v31 = vpop.f32.mrf.mxu0 }
 0x132   :  { %v532_v32 = vadd.f32 %v807_v30, %v531_v31 }
 0x133   :  { %v851_v33 = vpop.f32.mrf.mxu0 }
 0x134   :  { %v809_v34 = vmul.f32 -1.442695, %v532_v32 }
 0x136   :  { %891 = vpow2.f32 %v809_v34 }
 0x143   :  { %v892_v35 = vpop.eup %891 }
 0x144   :  { %v538_v36 = vadd.f32 1.0, %v892_v35 }
 0x146   :  { %893 = vrcp.f32 %v538_v36 }
 0x153   :  { %v894_v37 = vpop.eup %893 }
 0x154   :  { %v541_v38 = vmul.f32 %v894_v37, %v532_v32 }
 0x156   :  { %885 = vmatmul.mubr.f32.vlgmr.msra.gmra.mxu1 %v541_v38 }
 0x216   :  { %v631_v40 = vpop.f32.mrf.mxu1 }
 0x217   :  { %v632_v41 = vadd.f32 %v810_v39, %v631_v40 }
 0x218   :  { %v886_v42 = vpop.f32.mrf.mxu1 }
 0x219   :  { %635 = vst [vmem:[#allocation6] sm:$0xff] %v632_v41 }
 0x21a   :  { %918 = shalt.err (!%p915_p9)
}
 0x21b   :  { %645 = dma.vmem_to_hbm [thread:$0]  %s643_s23, 128, %s1110_s6, [#allocation7]  }
 0x21c   :  { %945 = dma.done.wait [#allocation7], 128  }
 0x21d   :  { %946 = vsyncadd [#allocation7], 4294967168 }
 0x21e   :  { %649 = vsyncpa [#allocation7], 1 }
 0x21f   :  { %650 = vsyncmov [#allocation3] }
 0x222   :  { %s651_s5 = vpop.sfrf %650 }
 0x223   :  { %p811_p10 = scmp.ne.s32.totalorder %s651_s5, 0 }
 0x225   :  { %655 = shalt.err (%p811_p10)  }
 0x226   :  { %657 = vsyncmov [#allocation3 + $0x1] }
 0x229   :  { %s658_s26 = vpop.sfrf %657 }
 0x22a   :  { %p812_p11 = scmp.ne.s32.totalorder %s658_s26, 0 }
 0x22c   :  { %662 = shalt.err (%p812_p11)  }
 0x22d   :  { %664 = vsyncmov [#allocation3 + $0x2] }
 0x230   :  { %s665_s27 = vpop.sfrf %664 }
 0x231   :  { %p813_p12 = scmp.ne.s32.totalorder %s665_s27, 0 }
 0x233   :  { %669 = shalt.err (%p813_p12)  }
 0x234   :  { %671 = vsyncmov [#allocation3 + $0x3] }
 0x237   :  { %s672_s28 = vpop.sfrf %671 }
 0x238   :  { %p814_p13 = scmp.ne.s32.totalorder %s672_s28, 0 }
 0x23a   :  { %676 = shalt.err (%p814_p13)  }
 0x23b   :  { %678 = vsyncmov [#allocation3 + $0x4] }
 0x23e   :  { %s679_s6 = vpop.sfrf %678 }
 0x23f   :  { %p815_p0 = scmp.ne.s32.totalorder %s679_s6, 0 }
 0x241   :  { %683 = shalt.err (%p815_p0)  }
 0x242   :  { %685 = vsyncmov [#allocation3 + $0x5] }
 0x245   :  { %s686_s29 = vpop.sfrf %685 }
 0x246   :  { %p816_p1 = scmp.ne.s32.totalorder %s686_s29, 0 }
 0x248   :  { %690 = shalt.err (%p816_p1)  }
 0x249   :  { %692 = vsyncmov [#allocation3 + $0x6] }
 0x24c   :  { %s693_s0 = vpop.sfrf %692 }
 0x24d   :  { %p817_p2 = scmp.ne.s32.totalorder %s693_s0, 0 }
 0x24f   :  { %697 = shalt.err (%p817_p2)  }
 0x250   :  { %699 = vsyncmov [#allocation3 + $0x7] }
 0x253   :  { %s700_s30 = vpop.sfrf %699 }
 0x254   :  { %p818_p3 = scmp.ne.s32.totalorder %s700_s30, 0 }
 0x256   :  { %704 = shalt.err (%p818_p3)  }

</bundles_post_ra>
